<compile_context>
chip_gen: v7x
topology: tpu7x:2x2x1
jax: 0.10.0
libtpu: 0.0.40
codegen_flags: <defaults>
</compile_context>

<pallas_src>
import math

import jax
import jax.numpy as jnp
from jax.experimental import pallas as pl
from jax.experimental.pallas import tpu as pltpu

_LANES = 128


def _dma_view_kernel(x_hbm, o_hbm, sem):
    # View does not change values, only shape; the kernel is one HBM->HBM DMA.
    cp = pltpu.make_async_copy(x_hbm, o_hbm, sem)
    cp.start()
    cp.wait()


def view_pallas(x, target_shape, use_pallas_copy=True):
    """Pallas equivalent of View(target_shape).forward(x).

    x: array of shape (B, ...) with prod(...) == prod(target_shape).
    Returns array of shape (B, *target_shape), same dtype as x.
    """
    batch = x.shape[0]
    n = math.prod(x.shape[1:])
    assert n == math.prod(target_shape), (
        f"cannot view {x.shape} as (batch, {target_shape})")
    out_shape = (batch, *target_shape)

    # Production path: a contiguous view is metadata-only (zero HBM traffic).
    if not use_pallas_copy:
        return x.reshape(out_shape)

    total = batch * n
    if total == 0:
        # Empty tensor: nothing to move; metadata reshape is exact and free.
        return x.reshape(out_shape)

    itemsize = jnp.dtype(x.dtype).itemsize

    # Shape the DMA operates on.  Prefer a lane-dense (rows, 128) slab (exact
    # HBM tiling on both sides); otherwise copy in the target shape directly.
    # Either way it is a single full-ref, same-shape HBM->HBM DMA.
    if total % _LANES == 0:
        dma_shape = (total // _LANES, _LANES)
    else:
        dma_shape = out_shape

    # Row-major flatten/regroup — preserves linear element order, so the DMA
    # result matches torch's contiguous .view().
    src = x.reshape(dma_shape)

    out = pl.pallas_call(
        _dma_view_kernel,
        out_shape=jax.ShapeDtypeStruct(dma_shape, x.dtype),
        in_specs=[pl.BlockSpec(memory_space=pl.ANY)],
        out_specs=pl.BlockSpec(memory_space=pl.ANY),
        scratch_shapes=[pltpu.SemaphoreType.DMA],
        cost_estimate=pl.CostEstimate(
            flops=0,
            transcendentals=0,
            bytes_accessed=2 * total * itemsize,
        ),
    )(src)

    return out.reshape(out_shape)


if __name__ == "__main__":
    key = jax.random.PRNGKey(0)

    # Small example consistent with a conv-net use of View:
    # input (B, C, H, W) = (2, 4, 16, 16) -> View((16, 64)) -> (2, 16, 64)
    x = jax.random.normal(key, (2, 4, 16, 16), dtype=jnp.float32)
    target_shape = (16, 64)  # prod == 4*16*16 == 1024

    out = view_pallas(x, target_shape)
    out = jax.block_until_ready(out)

    ref = x.reshape((x.shape[0], *target_shape))
    assert out.shape == (2, 16, 64), out.shape
    assert out.dtype == x.dtype
    assert bool(jnp.array_equal(out, ref))

    # Second check: different dtype + different target factorization.
    xb = jax.random.normal(key, (2, 8, 16, 16), dtype=jnp.bfloat16)
    outb = view_pallas(xb, (32, 64))
    outb = jax.block_until_ready(outb)
    refb = xb.reshape((2, 32, 64))
    assert outb.shape == (2, 32, 64) and outb.dtype == xb.dtype
    assert bool(jnp.array_equal(outb, refb))

    print("KERNEL_OK")
</pallas_src>

<mosaic_0001>
module attributes {stable_mosaic.version = 11 : i64} {
  func.func @_dma_view_kernel(%arg0: memref<16x128xf32, #tpu.memory_space<any>>, %arg1: memref<16x128xf32, #tpu.memory_space<any>>, %arg2: memref<!tpu.dma_semaphore, #tpu.memory_space<semaphore_mem>>) attributes {dimension_semantics = [], scalar_prefetch = 0 : i64, scratch_operands = 1 : i64, tpu.core_type = #tpu.core_type<tc>} {
    tpu.enqueue_dma source(%arg0 : memref<16x128xf32, #tpu.memory_space<any>>) target(%arg1 : memref<16x128xf32, #tpu.memory_space<any>>) target_semaphore(%arg2 : memref<!tpu.dma_semaphore, #tpu.memory_space<semaphore_mem>>)
    tpu.wait_dma2 semaphore(%arg2 : memref<!tpu.dma_semaphore, #tpu.memory_space<semaphore_mem>>) src(%arg0 : memref<16x128xf32, #tpu.memory_space<any>>) dst(%arg1 : memref<16x128xf32, #tpu.memory_space<any>>)
    return
  }
}

</mosaic_0001>

<bundles_post_ra>
// kernel: tpu_custom_call.1
= control target key start
LH: loop header
LB: loop body
LE: loop exit
PB: predicated region body
PF: predicated region fallthrough
CT: control target
= control target key end

     0   :  { %s34_s6 = smov [#allocation2]   ;;  %s35_s7 = smov [#allocation3]   ;;  %s53_s0 = inlined_call_operand.hbm [shape: f32[16,128], index: 0, kind: input, shape index: {}]   ;;  %s54_s1 = inlined_call_operand.hbm [shape: f32[16,128], index: 1, kind: output, shape index: {}]  }
   0x1   :  { %s36_s8 = smov 0  }
   0x2   :  { %18 = dma.general %s53_s0, 256, %s54_s1, %s34_s6, %s35_s7, [#allocation4], %s36_s8, 0  }
   0x3   :  { %32 = dma.done.wait [#allocation2], 256 }
   0x4   :  { %33 = vsyncadd [#allocation2], 4294967040 }
   0x5   :  { %22 = vsyncmov [#allocation2] }
   0x8   :  { %s23_s13 = vpop.sfrf %22 }
   0x9   :  { %p28_p0 = scmp.ne.s32.totalorder %s23_s13, 0 }
   0xb   :  { %27 = shalt.err (%p28_p0)  }

</bundles_post_ra>
